<compile_context>
chip_gen: v5e
topology: v5e:2x2
jax: 0.10.0
libtpu: 0.0.40
codegen_flags: <defaults>
</compile_context>

<pallas_src>
import math
import jax
import jax.numpy as jnp
from jax import lax
from jax.experimental import pallas as pl
from jax.experimental.pallas import tpu as pltpu


def _decoder_kernel(x_ref, h0_ref, w_ih_t_ref, w_hh_t_ref, b_gi_ref, b_hn_ref,
                    fc_w_t_ref, fc_b_ref, pred_ref, h_out_ref):
    """Kernel refs:
      x_ref      : (T*B, I)  input sequence, seq-major flattened (row = t*B + b)
      h0_ref     : (B, H)    initial hidden state
      w_ih_t_ref : (I, 3H)   GRU input weights, pre-transposed, [r|z|n] columns
      w_hh_t_ref : (H, 3H)   GRU hidden weights, pre-transposed & fused, [r|z|n]
      b_gi_ref   : (1, 3H)   folded input-side biases [b_ir+b_hr, b_iz+b_hz, b_in]
      b_hn_ref   : (1, H)    hidden bias of the n-gate (stays under r*(...))
      fc_w_t_ref : (H, O)    Linear weight, pre-transposed
      fc_b_ref   : (O, 1)    Linear bias (column)
      pred_ref   : (O, T*B)  exp(Linear(h_t)), lane-dense over T*B
      h_out_ref  : (B, H)    final hidden state
    """
    TB = x_ref.shape[0]
    B, H = h0_ref.shape
    T = TB // B
    O = fc_w_t_ref.shape[1]

    # ---- Prologue: hoist the input projection out of the serial recurrence. ----
    # One (T*B, I) x (I, 3H) matmul for all timesteps; result stays in vregs.
    gi = jnp.dot(x_ref[...], w_ih_t_ref[...],
                 preferred_element_type=jnp.float32) + b_gi_ref[...]       # (T*B, 3H)
    gi_r = gi[:, 0:H]                                                      # (T*B, H)
    gi_z = gi[:, H:2 * H]
    gi_n = gi[:, 2 * H:3 * H]

    w_hh_t = w_hh_t_ref[...]                                               # (H, 3H)
    b_hn = jnp.broadcast_to(b_hn_ref[...], (B, H))                         # hoisted broadcast

    # ---- Recurrence: h carried as a value; one fused MXU matmul per step. ----
    h = h0_ref[...]
    h_list = []
    for t in range(T):                       # static trip count -> fully unrolled
        gh = jnp.dot(h, w_hh_t, preferred_element_type=jnp.float32)       # (B, 3H)
        lo = t * B
        r = jax.nn.sigmoid(gi_r[lo:lo + B, :] + gh[:, 0:H])
        z = jax.nn.sigmoid(gi_z[lo:lo + B, :] + gh[:, H:2 * H])
        n = jnp.tanh(gi_n[lo:lo + B, :] + r * (gh[:, 2 * H:3 * H] + b_hn))
        h = (1.0 - z) * n + z * h
        h_list.append(h)
    h_out_ref[...] = h

    # ---- Epilogue: batched Linear + exp over all T*B columns, lane-dense store. ----
    hs_t = jnp.concatenate(h_list, axis=0).T                               # (H, T*B)
    if O == 1:
        # Skip the MXU (only 1 live output lane): VPU multiply + sublane reduce.
        logits = jnp.sum(hs_t * fc_w_t_ref[...], axis=0, keepdims=True)   # (1, T*B)
    else:
        logits = lax.dot_general(fc_w_t_ref[...], hs_t,
                                 (((0,), (0,)), ((), ())),
                                 preferred_element_type=jnp.float32)      # (O, T*B)
    pred_ref[...] = jnp.exp(logits + fc_b_ref[...])


def decoder_forward(x, hidden, params):
    """x: (B, T, I) float32, hidden: (1, B, H) float32 (PyTorch conventions)."""
    B, T, I = x.shape
    H = params["w_hh"].shape[1]
    O = params["fc_w"].shape[0]

    # Layout plumbing in plain JAX (done once, outside the kernel).
    x_flat = jnp.transpose(x, (1, 0, 2)).reshape(T * B, I)   # row index = t*B + b
    h0 = hidden[0]                                           # (B, H)

    w_ih_t = params["w_ih"].T                                # (I, 3H), [r|z|n]
    w_hh_t = params["w_hh"].T                                # (H, 3H) == [W_hr^T | W_hz^T | W_hn^T]

    b_ih = params["b_ih"]
    b_hh = params["b_hh"]
    # r/z hidden biases fold into the hoisted input projection; b_hn stays inside
    # the loop because it sits under r * (W_hn h + b_hn).
    b_gi = jnp.concatenate([b_ih[0:H] + b_hh[0:H],
                            b_ih[H:2 * H] + b_hh[H:2 * H],
                            b_ih[2 * H:3 * H]]).reshape(1, 3 * H)
    b_hn = b_hh[2 * H:3 * H].reshape(1, H)

    fc_w_t = params["fc_w"].T.reshape(H, O)                  # (H, O)
    fc_b = params["fc_b"].reshape(O, 1)                      # (O, 1)

    vmem = pl.BlockSpec(memory_space=pltpu.MemorySpace.VMEM)

    # Grid-less single invocation: the whole problem fits trivially in VMEM/vregs.
    # TODO(synk): for large batch on v7x, add a batch grid axis with
    # dimension_semantics=("parallel",) so both TensorCores are used.
    pred_row, h_out = pl.pallas_call(
        _decoder_kernel,
        out_shape=(
            jax.ShapeDtypeStruct((O, T * B), jnp.float32),
            jax.ShapeDtypeStruct((B, H), jnp.float32),
        ),
        in_specs=[vmem] * 8,
        out_specs=(vmem, vmem),
    )(x_flat, h0, w_ih_t, w_hh_t, b_gi, b_hn, fc_w_t, fc_b)

    prediction = jnp.transpose(pred_row.reshape(O, T, B), (2, 1, 0))   # (B, T, O)
    hidden_out = h_out[None]                                           # (1, B, H)
    return prediction, hidden_out


def init_params(key, input_size=3, hidden_size=8, output_size=1):
    """Deterministic init matching the shapes of torch.nn.GRU / Linear."""
    stdv = 1.0 / math.sqrt(hidden_size)
    ks = jax.random.split(key, 6)
    u = lambda k, shape: jax.random.uniform(k, shape, jnp.float32, -stdv, stdv)
    return {
        "w_ih": u(ks[0], (3 * hidden_size, input_size)),   # weight_ih_l0
        "w_hh": u(ks[1], (3 * hidden_size, hidden_size)),  # weight_hh_l0
        "b_ih": u(ks[2], (3 * hidden_size,)),              # bias_ih_l0
        "b_hh": u(ks[3], (3 * hidden_size,)),              # bias_hh_l0
        "fc_w": u(ks[4], (output_size, hidden_size)),      # fc.weight
        "fc_b": u(ks[5], (output_size,)),                  # fc.bias
    }


def _reference_forward(x, hidden, params):
    """Pure-JAX reference of the PyTorch GRU + Linear + exp (lengths=None path)."""
    H = params["w_hh"].shape[1]
    w_ih_t = params["w_ih"].T
    w_hh_t = params["w_hh"].T
    b_ih = params["b_ih"]
    b_hh = params["b_hh"]

    def cell(h, x_t):
        gi = x_t @ w_ih_t + b_ih
        gh = h @ w_hh_t + b_hh
        r = jax.nn.sigmoid(gi[:, :H] + gh[:, :H])
        z = jax.nn.sigmoid(gi[:, H:2 * H] + gh[:, H:2 * H])
        n = jnp.tanh(gi[:, 2 * H:] + r * gh[:, 2 * H:])
        h_new = (1.0 - z) * n + z * h
        return h_new, h_new

    xs = jnp.transpose(x, (1, 0, 2))              # (T, B, I)
    h_last, hs = lax.scan(cell, hidden[0], xs)    # hs: (T, B, H)
    out = jnp.transpose(hs, (1, 0, 2))            # (B, T, H)
    pred = jnp.exp(out @ params["fc_w"].T + params["fc_b"])
    return pred, h_last[None]


if __name__ == "__main__":
    # lengths=None path only (packed-sequence path is glue, not compute).
    # TODO(synk): pack_padded_sequence / pad_packed_sequence (lengths != None) not implemented.
    B, T, I, H, O = 2, 8, 3, 8, 1

    key = jax.random.PRNGKey(0)
    k_param, k_x, k_h = jax.random.split(key, 3)
    params = init_params(k_param, input_size=I, hidden_size=H, output_size=O)
    x = jax.random.normal(k_x, (B, T, I), jnp.float32)
    hidden = jax.random.normal(k_h, (1, B, H), jnp.float32)

    fwd = jax.jit(decoder_forward)
    pred, h_out = fwd(x, hidden, params)
    pred = jax.block_until_ready(pred)
    h_out = jax.block_until_ready(h_out)

    pred_ref, h_ref = _reference_forward(x, hidden, params)
    assert pred.shape == (B, T, O) and h_out.shape == (1, B, H)
    assert jnp.allclose(pred, pred_ref, atol=1e-5, rtol=1e-5)
    assert jnp.allclose(h_out, h_ref, atol=1e-5, rtol=1e-5)

    print("KERNEL_OK")
</pallas_src>

<mosaic_0001>
module attributes {stable_mosaic.version = 11 : i64} {
  func.func @_decoder_kernel(%arg0: memref<16x3xf32, #tpu.memory_space<vmem>>, %arg1: memref<2x8xf32, #tpu.memory_space<vmem>>, %arg2: memref<3x24xf32, #tpu.memory_space<vmem>>, %arg3: memref<8x24xf32, #tpu.memory_space<vmem>>, %arg4: memref<1x24xf32, #tpu.memory_space<vmem>>, %arg5: memref<1x8xf32, #tpu.memory_space<vmem>>, %arg6: memref<8x1xf32, #tpu.memory_space<vmem>>, %arg7: memref<1x1xf32, #tpu.memory_space<vmem>>, %arg8: memref<1x16xf32, #tpu.memory_space<vmem>>, %arg9: memref<2x8xf32, #tpu.memory_space<vmem>>) attributes {dimension_semantics = [], scalar_prefetch = 0 : i64, scratch_operands = 0 : i64, tpu.core_type = #tpu.core_type<tc>} {
    %c0 = arith.constant 0 : index
    %c0_0 = arith.constant 0 : index
    %0 = vector.load %arg0[%c0, %c0_0] : memref<16x3xf32, #tpu.memory_space<vmem>>, vector<16x3xf32>
    %c0_1 = arith.constant 0 : index
    %c0_2 = arith.constant 0 : index
    %1 = vector.load %arg2[%c0_1, %c0_2] : memref<3x24xf32, #tpu.memory_space<vmem>>, vector<3x24xf32>
    %cst = arith.constant dense<0.000000e+00> : vector<16x24xf32>
    %2 = tpu.matmul %0, %1, %cst {dimension_numbers = #tpu.dot_dimension_numbers<[1], [0], [0], [1], [0, 0, 1, 1], [], []>} : vector<16x3xf32>, vector<3x24xf32>, vector<16x24xf32> -> vector<16x24xf32>
    %c0_3 = arith.constant 0 : index
    %c0_4 = arith.constant 0 : index
    %3 = vector.load %arg4[%c0_3, %c0_4] : memref<1x24xf32, #tpu.memory_space<vmem>>, vector<1x24xf32>
    %4 = vector.broadcast %3 : vector<1x24xf32> to vector<16x24xf32>
    %5 = arith.addf %2, %4 : vector<16x24xf32>
    %6 = vector.extract_strided_slice %5 {offsets = [0, 0], sizes = [16, 8], strides = [1, 1]} : vector<16x24xf32> to vector<16x8xf32>
    %7 = vector.extract_strided_slice %5 {offsets = [0, 8], sizes = [16, 8], strides = [1, 1]} : vector<16x24xf32> to vector<16x8xf32>
    %8 = vector.extract_strided_slice %5 {offsets = [0, 16], sizes = [16, 8], strides = [1, 1]} : vector<16x24xf32> to vector<16x8xf32>
    %c0_5 = arith.constant 0 : index
    %c0_6 = arith.constant 0 : index
    %9 = vector.load %arg3[%c0_5, %c0_6] : memref<8x24xf32, #tpu.memory_space<vmem>>, vector<8x24xf32>
    %c0_7 = arith.constant 0 : index
    %c0_8 = arith.constant 0 : index
    %10 = vector.load %arg5[%c0_7, %c0_8] : memref<1x8xf32, #tpu.memory_space<vmem>>, vector<1x8xf32>
    %11 = vector.shape_cast %10 : vector<1x8xf32> to vector<1x8xf32>
    %12 = vector.broadcast %11 : vector<1x8xf32> to vector<2x8xf32>
    %c0_9 = arith.constant 0 : index
    %c0_10 = arith.constant 0 : index
    %13 = vector.load %arg1[%c0_9, %c0_10] : memref<2x8xf32, #tpu.memory_space<vmem>>, vector<2x8xf32>
    %cst_11 = arith.constant dense<0.000000e+00> : vector<2x24xf32>
    %14 = tpu.matmul %13, %9, %cst_11 {dimension_numbers = #tpu.dot_dimension_numbers<[1], [0], [0], [1], [0, 0, 1, 1], [], []>} : vector<2x8xf32>, vector<8x24xf32>, vector<2x24xf32> -> vector<2x24xf32>
    %15 = vector.extract_strided_slice %6 {offsets = [0, 0], sizes = [2, 8], strides = [1, 1]} : vector<16x8xf32> to vector<2x8xf32>
    %16 = vector.extract_strided_slice %14 {offsets = [0, 0], sizes = [2, 8], strides = [1, 1]} : vector<2x24xf32> to vector<2x8xf32>
    %17 = arith.addf %15, %16 : vector<2x8xf32>
    %18 = arith.negf %17 : vector<2x8xf32>
    %19 = math.exp %18 : vector<2x8xf32>
    %cst_12 = arith.constant 1.000000e+00 : f32
    %20 = vector.broadcast %cst_12 : f32 to vector<2x8xf32>
    %21 = arith.addf %20, %19 : vector<2x8xf32>
    %22 = arith.divf %20, %21 : vector<2x8xf32>
    %23 = vector.extract_strided_slice %7 {offsets = [0, 0], sizes = [2, 8], strides = [1, 1]} : vector<16x8xf32> to vector<2x8xf32>
    %24 = vector.extract_strided_slice %14 {offsets = [0, 8], sizes = [2, 8], strides = [1, 1]} : vector<2x24xf32> to vector<2x8xf32>
    %25 = arith.addf %23, %24 : vector<2x8xf32>
    %26 = arith.negf %25 : vector<2x8xf32>
    %27 = math.exp %26 : vector<2x8xf32>
    %cst_13 = arith.constant 1.000000e+00 : f32
    %28 = vector.broadcast %cst_13 : f32 to vector<2x8xf32>
    %29 = arith.addf %28, %27 : vector<2x8xf32>
    %30 = arith.divf %28, %29 : vector<2x8xf32>
    %31 = vector.extract_strided_slice %8 {offsets = [0, 0], sizes = [2, 8], strides = [1, 1]} : vector<16x8xf32> to vector<2x8xf32>
    %32 = vector.extract_strided_slice %14 {offsets = [0, 16], sizes = [2, 8], strides = [1, 1]} : vector<2x24xf32> to vector<2x8xf32>
    %33 = arith.addf %32, %12 : vector<2x8xf32>
    %34 = arith.mulf %22, %33 : vector<2x8xf32>
    %35 = arith.addf %31, %34 : vector<2x8xf32>
    %36 = math.tanh %35 : vector<2x8xf32>
    %cst_14 = arith.constant 1.000000e+00 : f32
    %37 = vector.broadcast %cst_14 : f32 to vector<2x8xf32>
    %38 = arith.subf %37, %30 : vector<2x8xf32>
    %39 = arith.mulf %38, %36 : vector<2x8xf32>
    %40 = arith.mulf %30, %13 : vector<2x8xf32>
    %41 = arith.addf %39, %40 : vector<2x8xf32>
    %cst_15 = arith.constant dense<0.000000e+00> : vector<2x24xf32>
    %42 = tpu.matmul %41, %9, %cst_15 {dimension_numbers = #tpu.dot_dimension_numbers<[1], [0], [0], [1], [0, 0, 1, 1], [], []>} : vector<2x8xf32>, vector<8x24xf32>, vector<2x24xf32> -> vector<2x24xf32>
    %43 = vector.extract_strided_slice %6 {offsets = [2, 0], sizes = [2, 8], strides = [1, 1]} : vector<16x8xf32> to vector<2x8xf32>
    %44 = vector.extract_strided_slice %42 {offsets = [0, 0], sizes = [2, 8], strides = [1, 1]} : vector<2x24xf32> to vector<2x8xf32>
    %45 = arith.addf %43, %44 : vector<2x8xf32>
    %46 = arith.negf %45 : vector<2x8xf32>
    %47 = math.exp %46 : vector<2x8xf32>
    %cst_16 = arith.constant 1.000000e+00 : f32
    %48 = vector.broadcast %cst_16 : f32 to vector<2x8xf32>
    %49 = arith.addf %48, %47 : vector<2x8xf32>
    %50 = arith.divf %48, %49 : vector<2x8xf32>
    %51 = vector.extract_strided_slice %7 {offsets = [2, 0], sizes = [2, 8], strides = [1, 1]} : vector<16x8xf32> to vector<2x8xf32>
    %52 = vector.extract_strided_slice %42 {offsets = [0, 8], sizes = [2, 8], strides = [1, 1]} : vector<2x24xf32> to vector<2x8xf32>
    %53 = arith.addf %51, %52 : vector<2x8xf32>
    %54 = arith.negf %53 : vector<2x8xf32>
    %55 = math.exp %54 : vector<2x8xf32>
    %cst_17 = arith.constant 1.000000e+00 : f32
    %56 = vector.broadcast %cst_17 : f32 to vector<2x8xf32>
    %57 = arith.addf %56, %55 : vector<2x8xf32>
    %58 = arith.divf %56, %57 : vector<2x8xf32>
    %59 = vector.extract_strided_slice %8 {offsets = [2, 0], sizes = [2, 8], strides = [1, 1]} : vector<16x8xf32> to vector<2x8xf32>
    %60 = vector.extract_strided_slice %42 {offsets = [0, 16], sizes = [2, 8], strides = [1, 1]} : vector<2x24xf32> to vector<2x8xf32>
    %61 = arith.addf %60, %12 : vector<2x8xf32>
    %62 = arith.mulf %50, %61 : vector<2x8xf32>
    %63 = arith.addf %59, %62 : vector<2x8xf32>
    %64 = math.tanh %63 : vector<2x8xf32>
    %cst_18 = arith.constant 1.000000e+00 : f32
    %65 = vector.broadcast %cst_18 : f32 to vector<2x8xf32>
    %66 = arith.subf %65, %58 : vector<2x8xf32>
    %67 = arith.mulf %66, %64 : vector<2x8xf32>
    %68 = arith.mulf %58, %41 : vector<2x8xf32>
    %69 = arith.addf %67, %68 : vector<2x8xf32>
    %cst_19 = arith.constant dense<0.000000e+00> : vector<2x24xf32>
    %70 = tpu.matmul %69, %9, %cst_19 {dimension_numbers = #tpu.dot_dimension_numbers<[1], [0], [0], [1], [0, 0, 1, 1], [], []>} : vector<2x8xf32>, vector<8x24xf32>, vector<2x24xf32> -> vector<2x24xf32>
    %71 = vector.extract_strided_slice %6 {offsets = [4, 0], sizes = [2, 8], strides = [1, 1]} : vector<16x8xf32> to vector<2x8xf32>
    %72 = vector.extract_strided_slice %70 {offsets = [0, 0], sizes = [2, 8], strides = [1, 1]} : vector<2x24xf32> to vector<2x8xf32>
    %73 = arith.addf %71, %72 : vector<2x8xf32>
    %74 = arith.negf %73 : vector<2x8xf32>
    %75 = math.exp %74 : vector<2x8xf32>
    %cst_20 = arith.constant 1.000000e+00 : f32
    %76 = vector.broadcast %cst_20 : f32 to vector<2x8xf32>
    %77 = arith.addf %76, %75 : vector<2x8xf32>
    %78 = arith.divf %76, %77 : vector<2x8xf32>
    %79 = vector.extract_strided_slice %7 {offsets = [4, 0], sizes = [2, 8], strides = [1, 1]} : vector<16x8xf32> to vector<2x8xf32>
    %80 = vector.extract_strided_slice %70 {offsets = [0, 8], sizes = [2, 8], strides = [1, 1]} : vector<2x24xf32> to vector<2x8xf32>
    %81 = arith.addf %79, %80 : vector<2x8xf32>
    %82 = arith.negf %81 : vector<2x8xf32>
    %83 = math.exp %82 : vector<2x8xf32>
    %cst_21 = arith.constant 1.000000e+00 : f32
    %84 = vector.broadcast %cst_21 : f32 to vector<2x8xf32>
    %85 = arith.addf %84, %83 : vector<2x8xf32>
    %86 = arith.divf %84, %85 : vector<2x8xf32>
    %87 = vector.extract_strided_slice %8 {offsets = [4, 0], sizes = [2, 8], strides = [1, 1]} : vector<16x8xf32> to vector<2x8xf32>
    %88 = vector.extract_strided_slice %70 {offsets = [0, 16], sizes = [2, 8], strides = [1, 1]} : vector<2x24xf32> to vector<2x8xf32>
    %89 = arith.addf %88, %12 : vector<2x8xf32>
    %90 = arith.mulf %78, %89 : vector<2x8xf32>
    %91 = arith.addf %87, %90 : vector<2x8xf32>
    %92 = math.tanh %91 : vector<2x8xf32>
    %cst_22 = arith.constant 1.000000e+00 : f32
    %93 = vector.broadcast %cst_22 : f32 to vector<2x8xf32>
    %94 = arith.subf %93, %86 : vector<2x8xf32>
    %95 = arith.mulf %94, %92 : vector<2x8xf32>
    %96 = arith.mulf %86, %69 : vector<2x8xf32>
    %97 = arith.addf %95, %96 : vector<2x8xf32>
    %cst_23 = arith.constant dense<0.000000e+00> : vector<2x24xf32>
    %98 = tpu.matmul %97, %9, %cst_23 {dimension_numbers = #tpu.dot_dimension_numbers<[1], [0], [0], [1], [0, 0, 1, 1], [], []>} : vector<2x8xf32>, vector<8x24xf32>, vector<2x24xf32> -> vector<2x24xf32>
    %99 = vector.extract_strided_slice %6 {offsets = [6, 0], sizes = [2, 8], strides = [1, 1]} : vector<16x8xf32> to vector<2x8xf32>
    %100 = vector.extract_strided_slice %98 {offsets = [0, 0], sizes = [2, 8], strides = [1, 1]} : vector<2x24xf32> to vector<2x8xf32>
    %101 = arith.addf %99, %100 : vector<2x8xf32>
    %102 = arith.negf %101 : vector<2x8xf32>
    %103 = math.exp %102 : vector<2x8xf32>
    %cst_24 = arith.constant 1.000000e+00 : f32
    %104 = vector.broadcast %cst_24 : f32 to vector<2x8xf32>
    %105 = arith.addf %104, %103 : vector<2x8xf32>
    %106 = arith.divf %104, %105 : vector<2x8xf32>
    %107 = vector.extract_strided_slice %7 {offsets = [6, 0], sizes = [2, 8], strides = [1, 1]} : vector<16x8xf32> to vector<2x8xf32>
    %108 = vector.extract_strided_slice %98 {offsets = [0, 8], sizes = [2, 8], strides = [1, 1]} : vector<2x24xf32> to vector<2x8xf32>
    %109 = arith.addf %107, %108 : vector<2x8xf32>
    %110 = arith.negf %109 : vector<2x8xf32>
    %111 = math.exp %110 : vector<2x8xf32>
    %cst_25 = arith.constant 1.000000e+00 : f32
    %112 = vector.broadcast %cst_25 : f32 to vector<2x8xf32>
    %113 = arith.addf %112, %111 : vector<2x8xf32>
    %114 = arith.divf %112, %113 : vector<2x8xf32>
    %115 = vector.extract_strided_slice %8 {offsets = [6, 0], sizes = [2, 8], strides = [1, 1]} : vector<16x8xf32> to vector<2x8xf32>
    %116 = vector.extract_strided_slice %98 {offsets = [0, 16], sizes = [2, 8], strides = [1, 1]} : vector<2x24xf32> to vector<2x8xf32>
    %117 = arith.addf %116, %12 : vector<2x8xf32>
    %118 = arith.mulf %106, %117 : vector<2x8xf32>
    %119 = arith.addf %115, %118 : vector<2x8xf32>
    %120 = math.tanh %119 : vector<2x8xf32>
    %cst_26 = arith.constant 1.000000e+00 : f32
    %121 = vector.broadcast %cst_26 : f32 to vector<2x8xf32>
    %122 = arith.subf %121, %114 : vector<2x8xf32>
    %123 = arith.mulf %122, %120 : vector<2x8xf32>
    %124 = arith.mulf %114, %97 : vector<2x8xf32>
    %125 = arith.addf %123, %124 : vector<2x8xf32>
    %cst_27 = arith.constant dense<0.000000e+00> : vector<2x24xf32>
    %126 = tpu.matmul %125, %9, %cst_27 {dimension_numbers = #tpu.dot_dimension_numbers<[1], [0], [0], [1], [0, 0, 1, 1], [], []>} : vector<2x8xf32>, vector<8x24xf32>, vector<2x24xf32> -> vector<2x24xf32>
    %127 = vector.extract_strided_slice %6 {offsets = [8, 0], sizes = [2, 8], strides = [1, 1]} : vector<16x8xf32> to vector<2x8xf32>
    %128 = vector.extract_strided_slice %126 {offsets = [0, 0], sizes = [2, 8], strides = [1, 1]} : vector<2x24xf32> to vector<2x8xf32>
    %129 = arith.addf %127, %128 : vector<2x8xf32>
    %130 = arith.negf %129 : vector<2x8xf32>
    %131 = math.exp %130 : vector<2x8xf32>
    %cst_28 = arith.constant 1.000000e+00 : f32
    %132 = vector.broadcast %cst_28 : f32 to vector<2x8xf32>
    %133 = arith.addf %132, %131 : vector<2x8xf32>
    %134 = arith.divf %132, %133 : vector<2x8xf32>
    %135 = vector.extract_strided_slice %7 {offsets = [8, 0], sizes = [2, 8], strides = [1, 1]} : vector<16x8xf32> to vector<2x8xf32>
    %136 = vector.extract_strided_slice %126 {offsets = [0, 8], sizes = [2, 8], strides = [1, 1]} : vector<2x24xf32> to vector<2x8xf32>
    %137 = arith.addf %135, %136 : vector<2x8xf32>
    %138 = arith.negf %137 : vector<2x8xf32>
    %139 = math.exp %138 : vector<2x8xf32>
    %cst_29 = arith.constant 1.000000e+00 : f32
    %140 = vector.broadcast %cst_29 : f32 to vector<2x8xf32>
    %141 = arith.addf %140, %139 : vector<2x8xf32>
    %142 = arith.divf %140, %141 : vector<2x8xf32>
    %143 = vector.extract_strided_slice %8 {offsets = [8, 0], sizes = [2, 8], strides = [1, 1]} : vector<16x8xf32> to vector<2x8xf32>
    %144 = vector.extract_strided_slice %126 {offsets = [0, 16], sizes = [2, 8], strides = [1, 1]} : vector<2x24xf32> to vector<2x8xf32>
    %145 = arith.addf %144, %12 : vector<2x8xf32>
    %146 = arith.mulf %134, %145 : vector<2x8xf32>
    %147 = arith.addf %143, %146 : vector<2x8xf32>
    %148 = math.tanh %147 : vector<2x8xf32>
    %cst_30 = arith.constant 1.000000e+00 : f32
    %149 = vector.broadcast %cst_30 : f32 to vector<2x8xf32>
    %150 = arith.subf %149, %142 : vector<2x8xf32>
    %151 = arith.mulf %150, %148 : vector<2x8xf32>
    %152 = arith.mulf %142, %125 : vector<2x8xf32>
    %153 = arith.addf %151, %152 : vector<2x8xf32>
    %cst_31 = arith.constant dense<0.000000e+00> : vector<2x24xf32>
    %154 = tpu.matmul %153, %9, %cst_31 {dimension_numbers = #tpu.dot_dimension_numbers<[1], [0], [0], [1], [0, 0, 1, 1], [], []>} : vector<2x8xf32>, vector<8x24xf32>, vector<2x24xf32> -> vector<2x24xf32>
    %155 = vector.extract_strided_slice %6 {offsets = [10, 0], sizes = [2, 8], strides = [1, 1]} : vector<16x8xf32> to vector<2x8xf32>
    %156 = vector.extract_strided_slice %154 {offsets = [0, 0], sizes = [2, 8], strides = [1, 1]} : vector<2x24xf32> to vector<2x8xf32>
    %157 = arith.addf %155, %156 : vector<2x8xf32>
    %158 = arith.negf %157 : vector<2x8xf32>
    %159 = math.exp %158 : vector<2x8xf32>
    %cst_32 = arith.constant 1.000000e+00 : f32
    %160 = vector.broadcast %cst_32 : f32 to vector<2x8xf32>
    %161 = arith.addf %160, %159 : vector<2x8xf32>
    %162 = arith.divf %160, %161 : vector<2x8xf32>
    %163 = vector.extract_strided_slice %7 {offsets = [10, 0], sizes = [2, 8], strides = [1, 1]} : vector<16x8xf32> to vector<2x8xf32>
    %164 = vector.extract_strided_slice %154 {offsets = [0, 8], sizes = [2, 8], strides = [1, 1]} : vector<2x24xf32> to vector<2x8xf32>
    %165 = arith.addf %163, %164 : vector<2x8xf32>
    %166 = arith.negf %165 : vector<2x8xf32>
    %167 = math.exp %166 : vector<2x8xf32>
    %cst_33 = arith.constant 1.000000e+00 : f32
    %168 = vector.broadcast %cst_33 : f32 to vector<2x8xf32>
    %169 = arith.addf %168, %167 : vector<2x8xf32>
    %170 = arith.divf %168, %169 : vector<2x8xf32>
    %171 = vector.extract_strided_slice %8 {offsets = [10, 0], sizes = [2, 8], strides = [1, 1]} : vector<16x8xf32> to vector<2x8xf32>
    %172 = vector.extract_strided_slice %154 {offsets = [0, 16], sizes = [2, 8], strides = [1, 1]} : vector<2x24xf32> to vector<2x8xf32>
    %173 = arith.addf %172, %12 : vector<2x8xf32>
    %174 = arith.mulf %162, %173 : vector<2x8xf32>
    %175 = arith.addf %171, %174 : vector<2x8xf32>
    %176 = math.tanh %175 : vector<2x8xf32>
    %cst_34 = arith.constant 1.000000e+00 : f32
    %177 = vector.broadcast %cst_34 : f32 to vector<2x8xf32>
    %178 = arith.subf %177, %170 : vector<2x8xf32>
    %179 = arith.mulf %178, %176 : vector<2x8xf32>
    %180 = arith.mulf %170, %153 : vector<2x8xf32>
    %181 = arith.addf %179, %180 : vector<2x8xf32>
    %cst_35 = arith.constant dense<0.000000e+00> : vector<2x24xf32>
    %182 = tpu.matmul %181, %9, %cst_35 {dimension_numbers = #tpu.dot_dimension_numbers<[1], [0], [0], [1], [0, 0, 1, 1], [], []>} : vector<2x8xf32>, vector<8x24xf32>, vector<2x24xf32> -> vector<2x24xf32>
    %183 = vector.extract_strided_slice %6 {offsets = [12, 0], sizes = [2, 8], strides = [1, 1]} : vector<16x8xf32> to vector<2x8xf32>
    %184 = vector.extract_strided_slice %182 {offsets = [0, 0], sizes = [2, 8], strides = [1, 1]} : vector<2x24xf32> to vector<2x8xf32>
    %185 = arith.addf %183, %184 : vector<2x8xf32>
    %186 = arith.negf %185 : vector<2x8xf32>
    %187 = math.exp %186 : vector<2x8xf32>
    %cst_36 = arith.constant 1.000000e+00 : f32
    %188 = vector.broadcast %cst_36 : f32 to vector<2x8xf32>
    %189 = arith.addf %188, %187 : vector<2x8xf32>
    %190 = arith.divf %188, %189 : vector<2x8xf32>
    %191 = vector.extract_strided_slice %7 {offsets = [12, 0], sizes = [2, 8], strides = [1, 1]} : vector<16x8xf32> to vector<2x8xf32>
    %192 = vector.extract_strided_slice %182 {offsets = [0, 8], sizes = [2, 8], strides = [1, 1]} : vector<2x24xf32> to vector<2x8xf32>
    %193 = arith.addf %191, %192 : vector<2x8xf32>
    %194 = arith.negf %193 : vector<2x8xf32>
    %195 = math.exp %194 : vector<2x8xf32>
    %cst_37 = arith.constant 1.000000e+00 : f32
    %196 = vector.broadcast %cst_37 : f32 to vector<2x8xf32>
    %197 = arith.addf %196, %195 : vector<2x8xf32>
    %198 = arith.divf %196, %197 : vector<2x8xf32>
    %199 = vector.extract_strided_slice %8 {offsets = [12, 0], sizes = [2, 8], strides = [1, 1]} : vector<16x8xf32> to vector<2x8xf32>
    %200 = vector.extract_strided_slice %182 {offsets = [0, 16], sizes = [2, 8], strides = [1, 1]} : vector<2x24xf32> to vector<2x8xf32>
    %201 = arith.addf %200, %12 : vector<2x8xf32>
    %202 = arith.mulf %190, %201 : vector<2x8xf32>
    %203 = arith.addf %199, %202 : vector<2x8xf32>
    %204 = math.tanh %203 : vector<2x8xf32>
    %cst_38 = arith.constant 1.000000e+00 : f32
    %205 = vector.broadcast %cst_38 : f32 to vector<2x8xf32>
    %206 = arith.subf %205, %198 : vector<2x8xf32>
    %207 = arith.mulf %206, %204 : vector<2x8xf32>
    %208 = arith.mulf %198, %181 : vector<2x8xf32>
    %209 = arith.addf %207, %208 : vector<2x8xf32>
    %cst_39 = arith.constant dense<0.000000e+00> : vector<2x24xf32>
    %210 = tpu.matmul %209, %9, %cst_39 {dimension_numbers = #tpu.dot_dimension_numbers<[1], [0], [0], [1], [0, 0, 1, 1], [], []>} : vector<2x8xf32>, vector<8x24xf32>, vector<2x24xf32> -> vector<2x24xf32>
    %211 = vector.extract_strided_slice %6 {offsets = [14, 0], sizes = [2, 8], strides = [1, 1]} : vector<16x8xf32> to vector<2x8xf32>
    %212 = vector.extract_strided_slice %210 {offsets = [0, 0], sizes = [2, 8], strides = [1, 1]} : vector<2x24xf32> to vector<2x8xf32>
    %213 = arith.addf %211, %212 : vector<2x8xf32>
    %214 = arith.negf %213 : vector<2x8xf32>
    %215 = math.exp %214 : vector<2x8xf32>
    %cst_40 = arith.constant 1.000000e+00 : f32
    %216 = vector.broadcast %cst_40 : f32 to vector<2x8xf32>
    %217 = arith.addf %216, %215 : vector<2x8xf32>
    %218 = arith.divf %216, %217 : vector<2x8xf32>
    %219 = vector.extract_strided_slice %7 {offsets = [14, 0], sizes = [2, 8], strides = [1, 1]} : vector<16x8xf32> to vector<2x8xf32>
    %220 = vector.extract_strided_slice %210 {offsets = [0, 8], sizes = [2, 8], strides = [1, 1]} : vector<2x24xf32> to vector<2x8xf32>
    %221 = arith.addf %219, %220 : vector<2x8xf32>
    %222 = arith.negf %221 : vector<2x8xf32>
    %223 = math.exp %222 : vector<2x8xf32>
    %cst_41 = arith.constant 1.000000e+00 : f32
    %224 = vector.broadcast %cst_41 : f32 to vector<2x8xf32>
    %225 = arith.addf %224, %223 : vector<2x8xf32>
    %226 = arith.divf %224, %225 : vector<2x8xf32>
    %227 = vector.extract_strided_slice %8 {offsets = [14, 0], sizes = [2, 8], strides = [1, 1]} : vector<16x8xf32> to vector<2x8xf32>
    %228 = vector.extract_strided_slice %210 {offsets = [0, 16], sizes = [2, 8], strides = [1, 1]} : vector<2x24xf32> to vector<2x8xf32>
    %229 = arith.addf %228, %12 : vector<2x8xf32>
    %230 = arith.mulf %218, %229 : vector<2x8xf32>
    %231 = arith.addf %227, %230 : vector<2x8xf32>
    %232 = math.tanh %231 : vector<2x8xf32>
    %cst_42 = arith.constant 1.000000e+00 : f32
    %233 = vector.broadcast %cst_42 : f32 to vector<2x8xf32>
    %234 = arith.subf %233, %226 : vector<2x8xf32>
    %235 = arith.mulf %234, %232 : vector<2x8xf32>
    %236 = arith.mulf %226, %209 : vector<2x8xf32>
    %237 = arith.addf %235, %236 : vector<2x8xf32>
    %c0_43 = arith.constant 0 : index
    %c0_44 = arith.constant 0 : index
    %238 = vector.load %arg9[%c0_43, %c0_44] : memref<2x8xf32, #tpu.memory_space<vmem>>, vector<2x8xf32>
    tpu.vector_store %arg9[%c0_43, %c0_44], %237 {strides = array<i32>} : memref<2x8xf32, #tpu.memory_space<vmem>>, vector<2x8xf32>,
    %239 = tpu.concatenate %41, %69, %97, %125, %153, %181, %209, %237 in 0 : vector<2x8xf32>, vector<2x8xf32>, vector<2x8xf32>, vector<2x8xf32>, vector<2x8xf32>, vector<2x8xf32>, vector<2x8xf32>, vector<2x8xf32> -> vector<16x8xf32>
    %240 = tpu.transpose %239, [1, 0] : vector<16x8xf32> -> vector<8x16xf32>
    %c0_45 = arith.constant 0 : index
    %c0_46 = arith.constant 0 : index
    %241 = vector.load %arg6[%c0_45, %c0_46] : memref<8x1xf32, #tpu.memory_space<vmem>>, vector<8x1xf32>
    %242 = vector.broadcast %241 : vector<8x1xf32> to vector<8x16xf32>
    %243 = arith.mulf %240, %242 : vector<8x16xf32>
    %cst_47 = arith.constant dense<0.000000e+00> : vector<16xf32>
    %244 = vector.multi_reduction <add>, %243, %cst_47 [0] : vector<8x16xf32> to vector<16xf32>
    %245 = vector.shape_cast %244 : vector<16xf32> to vector<1x16xf32>
    %c0_48 = arith.constant 0 : index
    %c0_49 = arith.constant 0 : index
    %246 = vector.load %arg7[%c0_48, %c0_49] : memref<1x1xf32, #tpu.memory_space<vmem>>, vector<1x1xf32>
    %247 = vector.broadcast %246 : vector<1x1xf32> to vector<1x16xf32>
    %248 = arith.addf %245, %247 : vector<1x16xf32>
    %249 = math.exp %248 : vector<1x16xf32>
    %c0_50 = arith.constant 0 : index
    %c0_51 = arith.constant 0 : index
    %250 = vector.load %arg8[%c0_50, %c0_51] : memref<1x16xf32, #tpu.memory_space<vmem>>, vector<1x16xf32>
    tpu.vector_store %arg8[%c0_50, %c0_51], %249 {strides = array<i32>} : memref<1x16xf32, #tpu.memory_space<vmem>>, vector<1x16xf32>,
    return
  }
}

</mosaic_0001>

<bundles_post_ra>
// kernel: decoder_forward.1
= control target key start
LH: loop header
LB: loop body
LE: loop exit
PB: predicated region body
PF: predicated region fallthrough
CT: control target
= control target key end

     0   :  { %s1043_s0 = inlined_call_operand.vmem [shape: f32[16,3], index: 0, kind: input, shape index: {}]   ;;  %s1044_s1 = inlined_call_operand.vmem [shape: f32[2,8], index: 1, kind: input, shape index: {}]   ;;  %s1045_s2 = inlined_call_operand.vmem [shape: f32[3,24], index: 2, kind: input, shape index: {}]   ;;  %s1046_s3 = inlined_call_operand.vmem [shape: f32[8,24], index: 3, kind: input, shape index: {}]   ;;  %s1047_s4 = inlined_call_operand.vmem [shape: f32[1,24], index: 4, kind: input, shape index: {}]   ;;  %s1048_s5 = inlined_call_operand.vmem [shape: f32[1,8], index: 5, kind: input, shape index: {}]   ;;  %s1049_s6 = inlined_call_operand.vmem [shape: f32[8,1], index: 6, kind: input, shape index: {}]   ;;  %s1050_s7 = inlined_call_operand.<no memory space> [shape: f32[1,1], index: 7, kind: input, shape index: {}]   ;;  %s1051_s8 = inlined_call_operand.vmem [shape: f32[1,16], index: 8, kind: output, shape index: {0}]   ;;  %s1052_s9 = inlined_call_operand.hbm [shape: f32[2,8], index: 9, kind: output, shape index: {1}]  }
   0x1   :  { %v15_v0 = vstv %s1050_s7 }
   0x2   :  { %16 = vst [vmem:[#allocation2] sm:$0x1] %v15_v0 }
   0x3   :  { %v36_v1 = vld [vmem:[%s1045_s2] sm:$0x7]  ;;  %vm48_vm0 = vcmask 1042432   ;;  %vm41_vm1 = vcmask 23552   ;;  %vm80_vm2 = vcmask 64512  }
   0x4   :  { %v75_v2 = vld [vmem:[%s1046_s3] sm:$0xff]  ;;  %749 = vmatpush.msk.msra.mxu0 %vm48_vm0, %v36_v1  ;;  %s856_s3 = smov 8  }
   0x5   :  { %v34_v3 = vld [vmem:[%s1043_s0] sm:$0xff]  ;;  %99 = vmatpush.msra.mxu1 %v75_v2  ;;  %170 = vmatpush.msra.mxu2 %v75_v2 }
   0x6   :  { %v79_v4 = vld [vmem:[%s1044_s1] sm:$0x3]  ;;  %750 = vmatmul.msk.f32.vlgmr.msra.gmra.mxu0 %vm41_vm1, %v34_v3 }
   0x7   :  { %752 = vmatmul.msk.f32.vlgmr.msra.gmra.mxu1 %vm80_vm2, %v79_v4  ;;  %v778_v5 = vld [vmem:[%s1048_s5] ss:$0 sm:$0xff]  ;;  %145 = vrot.lane.b32.xlu2 %v79_v4, %s856_s3 }
   0x8   :  { %17 = vsyncpa [#allocation4], 0  ;;  %s857_s19 = smov 16   ;;  %242 = vmatpush.msra.mxu3 %v75_v2  ;;  %314 = vmatpush.msrb.mxu1 %v75_v2  ;;  %s858_s1 = smov 112   ;;  %v940_v9 = vld [vmem:[%s1047_s4] ss:$0 sm:$0xff] }
   0x9   :  { %124 = vrot.lane.b32.xlu0 %v778_v5, %s857_s19  ;;  %386 = vmatpush.msrb.mxu2 %v75_v2  ;;  %s859_s4 = smov 120   ;;  %vm653_vm15 = vcmask 1041408   ;;  %vm655_vm0 = vcmask 1043456   ;;  %s738_s27 = sshll.u32 %s1052_s9, 4  ;;  %s739_s27 = int_to_ptr.hbm [resolvable:$true] %s738_s27 }
   0xa   :  { %452 = vmatpush.msrb.mxu3 %v75_v2  ;;  %524 = vmatpush.msrb.mxu0 %v75_v2 }
   0xb   :  { %596 = vmatpush.msra.mxu1 %v75_v2 }
  0x61   :  { %v146_v31 = vpop.permute.xlu2 %145 }
  0x7b   :  { %v933_v6 = vpop.permute.xlu0 %124 }
  0x83   :  { %v69_v10 = vpop.f32.mrf.mxu0 }
  0x84   :  { %v101_v7 = vpop.f32.mrf.mxu1  ;;  %v943_v11 = vadd.f32 %v940_v9, %v69_v10 }
  0x85   :  { %v127_v8 = vadd.f32 %v933_v6, %v101_v7 }
  0x86   :  { %v104_v12 = vadd.f32 %v101_v7, %v943_v11 }
  0x87   :  { %129 = vrot.lane.b32.xlu0 %v127_v8, %s858_s1 }
  0x88   :  { %v753_v13 = vmul.f32 -1.442695, %v104_v12 }
  0x8a   :  { %780 = vpow2.f32 %v753_v13 }
  0x90   :  { %v781_v14 = vpop.eup %780 }
  0x91   :  { %v108_v15 = vadd.f32 1.0, %v781_v14 }
  0x93   :  { %782 = vrcp.f32 %v108_v15  ;;  %v120_v21 = vand.u32 2147483648, %v108_v15  ;;  %vm114_vm4 = vweird.f32 %v108_v15  ;;  %v118_v22 = vand.u32 2147483647, %v108_v15 }
  0x95   :  { %v121_v24 = vor.u32 1.1754944e-38, %v120_v21  ;;  %vm119_vm6 = vcmp.eq.f32.partialorder %v118_v22, 8.507059e+37 }
  0x99   :  { %v783_v16 = vpop.eup %782 }
  0x9a   :  { %v110_v17 = vmul.f32 %v783_v16, %v108_v15  ;;  %vm115_vm3 = vweird.f32 %v783_v16 }
  0x9b   :  { %vm116_vm5 = vmor %vm114_vm4, %vm115_vm3 }
  0x9c   :  { %v111_v18 = vsub.f32 1.0, %v110_v17 }
  0x9e   :  { %v112_v19 = vmul.f32 %v783_v16, %v111_v18 }
  0xa0   :  { %v113_v20 = vadd.f32 %v783_v16, %v112_v19 }
  0xa2   :  { %v117_v23 = vsel %vm116_vm5, %v783_v16, %v113_v20 }
  0xa3   :  { %v122_v25 = vsel %vm119_vm6, %v121_v24, %v117_v23 }
  0xa4   :  { %v139_v32 = vsub.f32 1.0, %v122_v25  ;;  %v148_v34 = vmul.f32 %v146_v31, %v122_v25 }
  0xf9   :  { %v130_v26 = vpop.permute.xlu0 %129 }
  0xfa   :  { %v132_v27 = vmul.f32 %v130_v26, %v122_v25 }
  0xfc   :  { %134 = vrot.lane.b32.xlu1 %v132_v27, %s857_s19 }
 0x16e   :  { %v135_v28 = vpop.permute.xlu1 %134 }
 0x16f   :  { %v137_v29 = vadd.f32 %v135_v28, %v943_v11 }
 0x171   :  { %784 = vtanh.f32 %v137_v29 }
 0x177   :  { %v785_v30 = vpop.eup %784 }
 0x178   :  { %141 = vrot.lane.b32.xlu1 %v785_v30, %s859_s4 }
 0x1ea   :  { %v142_v33 = vpop.permute.xlu1 %141 }
 0x1eb   :  { %v144_v35 = vmul.f32 %v142_v33, %v139_v32 }
 0x1ed   :  { %v949_v36 = vadd.f32 %v148_v34, %v144_v35 }
 0x1ef   :  { %151 = vrot.lane.b32.xlu2 %v949_v36, %s859_s4  ;;  %v217_v62 = vrot.slane %v949_v36, 6 }
 0x249   :  { %v152_v37 = vpop.permute.xlu2 %151 }
 0x24a   :  { %754 = vmatmul.msk.f32.vlgmr.msra.gmra.mxu2 %vm80_vm2, %v152_v37 }
 0x2cd   :  { %v172_v38 = vpop.f32.mrf.mxu2 }
 0x2ce   :  { %v198_v39 = vadd.f32 %v172_v38, %v933_v6  ;;  %v176_v41 = vrot.slane %v172_v38, 6 }
 0x2d0   :  { %v200_v40 = vrot.slane %v198_v39, 6  ;;  %v178_v42 = vadd.f32 %v176_v41, %v943_v11 }
 0x2d2   :  { %201 = vrot.lane.b32.xlu0 %v200_v40, %s858_s1  ;;  %v755_v43 = vmul.f32 -1.442695, %v178_v42 }
 0x2d4   :  { %786 = vpow2.f32 %v755_v43 }
 0x2da   :  { %v787_v44 = vpop.eup %786 }
 0x2db   :  { %v182_v45 = vadd.f32 1.0, %v787_v44 }
 0x2dd   :  { %788 = vrcp.f32 %v182_v45  ;;  %v194_v51 = vand.u32 2147483648, %v182_v45  ;;  %vm188_vm8 = vweird.f32 %v182_v45  ;;  %v192_v52 = vand.u32 2147483647, %v182_v45 }
 0x2df   :  { %v195_v54 = vor.u32 1.1754944e-38, %v194_v51  ;;  %vm193_vm10 = vcmp.eq.f32.partialorder %v192_v52, 8.507059e+37 }
 0x2e3   :  { %v789_v46 = vpop.eup %788 }
 0x2e4   :  { %v184_v47 = vmul.f32 %v789_v46, %v182_v45  ;;  %vm189_vm7 = vweird.f32 %v789_v46 }
 0x2e5   :  { %vm190_vm9 = vmor %vm188_vm8, %vm189_vm7  ;;  %vm657_vm7 = vcmask 1045504  }
 0x2e6   :  { %v185_v48 = vsub.f32 1.0, %v184_v47 }
 0x2e8   :  { %v186_v49 = vmul.f32 %v789_v46, %v185_v48 }
 0x2ea   :  { %v187_v50 = vadd.f32 %v789_v46, %v186_v49 }
 0x2ec   :  { %v191_v53 = vsel %vm190_vm9, %v789_v46, %v187_v50 }
 0x2ed   :  { %v196_v56 = vsel %vm193_vm10, %v195_v54, %v191_v53 }
 0x2ee   :  { %v211_v61 = vsub.f32 1.0, %v196_v56  ;;  %v219_v1 = vmul.f32 %v217_v62, %v196_v56 }
 0x344   :  { %v202_v55 = vpop.permute.xlu0 %201 }
 0x345   :  { %v204_v57 = vmul.f32 %v202_v55, %v196_v56 }
 0x347   :  { %206 = vrot.lane.b32.xlu1 %v204_v57, %s857_s19 }
 0x3b9   :  { %v207_v58 = vpop.permute.xlu1 %206 }
 0x3ba   :  { %v209_v59 = vadd.f32 %v207_v58, %v943_v11 }
 0x3bc   :  { %790 = vtanh.f32 %v209_v59 }
 0x3c2   :  { %v791_v60 = vpop.eup %790 }
 0x3c3   :  { %213 = vrot.lane.b32.xlu2 %v791_v60, %s859_s4 }
 0x41d   :  { %v214_v63 = vpop.permute.xlu2 %213 }
 0x41e   :  { %v216_v0 = vmul.f32 %v214_v63, %v211_v61 }
 0x420   :  { %v220_v2 = vadd.f32 %v219_v1, %v216_v0 }
 0x422   :  { %v222_v3 = vrot.slane %v220_v2, 2  ;;  %v289_v32 = vrot.slane %v220_v2, 6  ;;  %v654_v38 = vsel %vm653_vm15, %v949_v36, %v220_v2 }
 0x424   :  { %223 = vrot.lane.b32.xlu0 %v222_v3, %s859_s4 }
 0x496   :  { %v224_v4 = vpop.permute.xlu0 %223 }
 0x497   :  { %756 = vmatmul.msk.f32.vlgmr.msra.gmra.mxu3 %vm80_vm2, %v224_v4 }
 0x51a   :  { %v244_v5 = vpop.f32.mrf.mxu3 }
 0x51b   :  { %v270_v7 = vadd.f32 %v244_v5, %v933_v6  ;;  %v248_v10 = vrot.slane %v244_v5, 4 }
 0x51d   :  { %v272_v8 = vrot.slane %v270_v7, 4  ;;  %v250_v12 = vadd.f32 %v248_v10, %v943_v11  ;;  %v35_v10 = vld [vmem:[%s1043_s0 + $0x8] sm:$0xff] }
 0x51e   :  { %751 = vmatmul.msk.f32.gmra.mxu0 %vm41_vm1, %v35_v10 }
 0x51f   :  { %273 = vrot.lane.b32.xlu1 %v272_v8, %s858_s1  ;;  %v757_v13 = vmul.f32 -1.442695, %v250_v12 }
 0x521   :  { %792 = vpow2.f32 %v757_v13 }
 0x527   :  { %v793_v14 = vpop.eup %792 }
 0x528   :  { %v254_v15 = vadd.f32 1.0, %v793_v14 }
 0x52a   :  { %794 = vrcp.f32 %v254_v15  ;;  %v266_v21 = vand.u32 2147483648, %v254_v15  ;;  %vm260_vm12 = vweird.f32 %v254_v15  ;;  %v264_v22 = vand.u32 2147483647, %v254_v15 }
 0x52c   :  { %v267_v24 = vor.u32 1.1754944e-38, %v266_v21  ;;  %vm265_vm14 = vcmp.eq.f32.partialorder %v264_v22, 8.507059e+37 }
 0x530   :  { %v795_v16 = vpop.eup %794 }
 0x531   :  { %v256_v17 = vmul.f32 %v795_v16, %v254_v15  ;;  %vm261_vm11 = vweird.f32 %v795_v16 }
 0x532   :  { %vm262_vm13 = vmor %vm260_vm12, %vm261_vm11 }
 0x533   :  { %v257_v18 = vsub.f32 1.0, %v256_v17 }
 0x535   :  { %v258_v19 = vmul.f32 %v795_v16, %v257_v18 }
 0x537   :  { %v259_v20 = vadd.f32 %v795_v16, %v258_v19 }
 0x539   :  { %v263_v23 = vsel %vm262_vm13, %v795_v16, %v259_v20 }
 0x53a   :  { %v268_v26 = vsel %vm265_vm14, %v267_v24, %v263_v23 }
 0x53b   :  { %v283_v31 = vsub.f32 1.0, %v268_v26  ;;  %v291_v34 = vmul.f32 %v289_v32, %v268_v26 }
 0x591   :  { %v274_v25 = vpop.permute.xlu1 %273 }
 0x592   :  { %v276_v27 = vmul.f32 %v274_v25, %v268_v26 }
 0x594   :  { %278 = vrot.lane.b32.xlu2 %v276_v27, %s857_s19 }
 0x59b   :  { %v72_v14 = vpop.f32.mrf.mxu0 }
 0x59c   :  { %v992_v15 = vadd.f32 %v940_v9, %v72_v14 }
 0x5ee   :  { %v279_v28 = vpop.permute.xlu2 %278 }
 0x5ef   :  { %v281_v29 = vadd.f32 %v279_v28, %v943_v11 }
 0x5f1   :  { %796 = vtanh.f32 %v281_v29 }
 0x5f7   :  { %v797_v30 = vpop.eup %796 }
 0x5f8   :  { %285 = vrot.lane.b32.xlu0 %v797_v30, %s859_s4 }
 0x66a   :  { %v286_v33 = vpop.permute.xlu0 %285 }
 0x66b   :  { %v288_v35 = vmul.f32 %v286_v33, %v283_v31 }
 0x66d   :  { %v292_v37 = vadd.f32 %v291_v34, %v288_v35 }
 0x66f   :  { %v294_v39 = vrot.slane %v292_v37, 4  ;;  %v656_v40 = vsel %vm655_vm0, %v654_v38, %v292_v37  ;;  %v361_v58 = vrot.slane %v292_v37, 6 }
 0x671   :  { %295 = vrot.lane.b32.xlu1 %v294_v39, %s859_s4 }
 0x6e3   :  { %v296_v41 = vpop.permute.xlu1 %295 }
 0x6e4   :  { %758 = vmatmul.msk.f32.vlgmr.msrb.gmra.mxu1 %vm80_vm2, %v296_v41 }
 0x761   :  { %v316_v42 = vpop.f32.mrf.mxu1 }
 0x762   :  { %v320_v43 = vrot.slane %v316_v42, 2  ;;  %v342_v44 = vadd.f32 %v316_v42, %v933_v6 }
 0x764   :  { %v322_v45 = vadd.f32 %v320_v43, %v943_v11  ;;  %v344_v46 = vrot.slane %v342_v44, 2 }
 0x766   :  { %v759_v47 = vmul.f32 -1.442695, %v322_v45  ;;  %345 = vrot.lane.b32.xlu2 %v344_v46, %s858_s1 }
 0x768   :  { %798 = vpow2.f32 %v759_v47 }
 0x76e   :  { %v799_v36 = vpop.eup %798 }
 0x76f   :  { %v326_v48 = vadd.f32 1.0, %v799_v36 }
 0x771   :  { %800 = vrcp.f32 %v326_v48  ;;  %v338_v52 = vand.u32 2147483648, %v326_v48  ;;  %v336_v54 = vand.u32 2147483647, %v326_v48  ;;  %vm332_vm4 = vweird.f32 %v326_v48 }
 0x773   :  { %v339_v56 = vor.u32 1.1754944e-38, %v338_v52  ;;  %vm337_vm6 = vcmp.eq.f32.partialorder %v336_v54, 8.507059e+37 }
 0x777   :  { %v801_v49 = vpop.eup %800 }
 0x778   :  { %v328_v50 = vmul.f32 %v801_v49, %v326_v48  ;;  %vm333_vm3 = vweird.f32 %v801_v49 }
 0x779   :  { %vm334_vm5 = vmor %vm332_vm4, %vm333_vm3 }
 0x77a   :  { %v329_v51 = vsub.f32 1.0, %v328_v50 }
 0x77c   :  { %v330_v53 = vmul.f32 %v801_v49, %v329_v51 }
 0x77e   :  { %v331_v55 = vadd.f32 %v801_v49, %v330_v53 }
 0x780   :  { %v335_v57 = vsel %vm334_vm5, %v801_v49, %v331_v55 }
 0x781   :  { %v340_v59 = vsel %vm337_vm6, %v339_v56, %v335_v57 }
 0x782   :  { %v363_v60 = vmul.f32 %v361_v58, %v340_v59  ;;  %v355_v2 = vsub.f32 1.0, %v340_v59 }
 0x7c0   :  { %v346_v61 = vpop.permute.xlu2 %345 }
 0x7c1   :  { %v348_v62 = vmul.f32 %v346_v61, %v340_v59 }
 0x7c3   :  { %350 = vrot.lane.b32.xlu0 %v348_v62, %s857_s19 }
 0x835   :  { %v351_v63 = vpop.permute.xlu0 %350 }
 0x836   :  { %v353_v0 = vadd.f32 %v351_v63, %v943_v11 }
 0x838   :  { %802 = vtanh.f32 %v353_v0 }
 0x83e   :  { %v803_v1 = vpop.eup %802 }
 0x83f   :  { %357 = vrot.lane.b32.xlu1 %v803_v1, %s859_s4 }
 0x8b1   :  { %v358_v3 = vpop.permute.xlu1 %357 }
 0x8b2   :  { %v360_v4 = vmul.f32 %v358_v3, %v355_v2 }
 0x8b4   :  { %v364_v5 = vadd.f32 %v363_v60, %v360_v4 }
 0x8b6   :  { %v366_v7 = vrot.slane %v364_v5, 6  ;;  %v981_v8 = vsel %vm657_vm7, %v656_v40, %v364_v5 }
 0x8b8   :  { %367 = vrot.lane.b32.xlu2 %v366_v7, %s859_s4 }
 0x912   :  { %v368_v11 = vpop.permute.xlu2 %367 }
 0x913   :  { %760 = vmatmul.msk.f32.vlgmr.msrb.gmra.mxu2 %vm80_vm2, %v368_v11 }
 0x996   :  { %v388_v12 = vpop.f32.mrf.mxu2 }
 0x997   :  { %v411_v13 = vadd.f32 %v388_v12, %v933_v6  ;;  %v391_v16 = vadd.f32 %v388_v12, %v992_v15 }
 0x999   :  { %413 = vrot.lane.b32.xlu0 %v411_v13, %s858_s1  ;;  %v761_v17 = vmul.f32 -1.442695, %v391_v16 }
 0x99b   :  { %804 = vpow2.f32 %v761_v17 }
 0x9a1   :  { %v805_v18 = vpop.eup %804 }
 0x9a2   :  { %v395_v19 = vadd.f32 1.0, %v805_v18 }
 0x9a4   :  { %806 = vrcp.f32 %v395_v19  ;;  %v407_v25 = vand.u32 2147483648, %v395_v19  ;;  %vm401_vm8 = vweird.f32 %v395_v19  ;;  %v405_v26 = vand.u32 2147483647, %v395_v19 }
 0x9a6   :  { %v408_v9 = vor.u32 1.1754944e-38, %v407_v25  ;;  %vm406_vm10 = vcmp.eq.f32.partialorder %v405_v26, 8.507059e+37 }
 0x9aa   :  { %v807_v20 = vpop.eup %806 }
 0x9ab   :  { %v397_v21 = vmul.f32 %v807_v20, %v395_v19  ;;  %vm402_vm1 = vweird.f32 %v807_v20 }
 0x9ac   :  { %vm403_vm9 = vmor %vm401_vm8, %vm402_vm1  ;;  %vm651_vm8 = vcmask 64518  }
 0x9ad   :  { %v398_v22 = vsub.f32 1.0, %v397_v21 }
 0x9af   :  { %v399_v23 = vmul.f32 %v807_v20, %v398_v22 }
 0x9b1   :  { %v400_v24 = vadd.f32 %v807_v20, %v399_v23 }
 0x9b3   :  { %v404_v27 = vsel %vm403_vm9, %v807_v20, %v400_v24  ;;  %vm727_vm9 = vcmask 122880  }
 0x9b4   :  { %v409_v29 = vsel %vm406_vm10, %v408_v9, %v404_v27 }
 0x9b5   :  { %v423_v34 = vsub.f32 1.0, %v409_v29  ;;  %v430_v37 = vmul.f32 %v409_v29, %v366_v7 }
 0xa0b   :  { %v414_v28 = vpop.permute.xlu0 %413 }
 0xa0c   :  { %v416_v30 = vmul.f32 %v414_v28, %v409_v29 }
 0xa0e   :  { %418 = vrot.lane.b32.xlu1 %v416_v30, %s857_s19 }
 0xa80   :  { %v419_v31 = vpop.permute.xlu1 %418 }
 0xa81   :  { %v421_v32 = vadd.f32 %v419_v31, %v992_v15 }
 0xa83   :  { %808 = vtanh.f32 %v421_v32 }
 0xa89   :  { %v809_v33 = vpop.eup %808 }
 0xa8a   :  { %425 = vrot.lane.b32.xlu2 %v809_v33, %s859_s4 }
 0xae4   :  { %v426_v35 = vpop.permute.xlu2 %425 }
 0xae5   :  { %v428_v38 = vmul.f32 %v426_v35, %v423_v34 }
 0xae7   :  { %v998_v39 = vadd.f32 %v430_v37, %v428_v38 }
 0xae9   :  { %433 = vrot.lane.b32.xlu0 %v998_v39, %s859_s4  ;;  %v499_v0 = vrot.slane %v998_v39, 6 }
 0xb5b   :  { %v434_v40 = vpop.permute.xlu0 %433 }
 0xb5c   :  { %762 = vmatmul.msk.f32.vlgmr.msrb.gmra.mxu3 %vm80_vm2, %v434_v40 }
 0xbdf   :  { %v454_v41 = vpop.f32.mrf.mxu3 }
 0xbe0   :  { %v480_v42 = vadd.f32 %v454_v41, %v933_v6  ;;  %v458_v44 = vrot.slane %v454_v41, 6 }
 0xbe2   :  { %v482_v43 = vrot.slane %v480_v42, 6  ;;  %v460_v45 = vadd.f32 %v458_v44, %v992_v15 }
 0xbe4   :  { %483 = vrot.lane.b32.xlu1 %v482_v43, %s858_s1  ;;  %v763_v46 = vmul.f32 -1.442695, %v460_v45 }
 0xbe6   :  { %810 = vpow2.f32 %v763_v46 }
 0xbec   :  { %v811_v47 = vpop.eup %810 }
 0xbed   :  { %v464_v36 = vadd.f32 1.0, %v811_v47 }
 0xbef   :  { %812 = vrcp.f32 %v464_v36  ;;  %v476_v53 = vand.u32 2147483648, %v464_v36  ;;  %vm470_vm12 = vweird.f32 %v464_v36  ;;  %v474_v54 = vand.u32 2147483647, %v464_v36 }
 0xbf1   :  { %v477_v56 = vor.u32 1.1754944e-38, %v476_v53  ;;  %vm475_vm14 = vcmp.eq.f32.partialorder %v474_v54, 8.507059e+37 }
 0xbf5   :  { %v813_v48 = vpop.eup %812 }
 0xbf6   :  { %v466_v49 = vmul.f32 %v813_v48, %v464_v36  ;;  %vm471_vm11 = vweird.f32 %v813_v48 }
 0xbf7   :  { %vm472_vm13 = vmor %vm470_vm12, %vm471_vm11 }
 0xbf8   :  { %v467_v50 = vsub.f32 1.0, %v466_v49 }
 0xbfa   :  { %v468_v51 = vmul.f32 %v813_v48, %v467_v50 }
 0xbfc   :  { %v469_v52 = vadd.f32 %v813_v48, %v468_v51 }
 0xbfe   :  { %v473_v55 = vsel %vm472_vm13, %v813_v48, %v469_v52 }
 0xbff   :  { %v478_v58 = vsel %vm475_vm14, %v477_v56, %v473_v55 }
 0xc00   :  { %v493_v63 = vsub.f32 1.0, %v478_v58  ;;  %v501_v3 = vmul.f32 %v499_v0, %v478_v58 }
 0xc56   :  { %v484_v57 = vpop.permute.xlu1 %483 }
 0xc57   :  { %v486_v59 = vmul.f32 %v484_v57, %v478_v58 }
 0xc59   :  { %488 = vrot.lane.b32.xlu2 %v486_v59, %s857_s19 }
 0xcb3   :  { %v489_v60 = vpop.permute.xlu2 %488 }
 0xcb4   :  { %v491_v61 = vadd.f32 %v489_v60, %v992_v15 }
 0xcb6   :  { %814 = vtanh.f32 %v491_v61  ;;  %v860_v61 = vmov 0  }
 0xcb7   :  { %775 = vset.pattern.permute.xlu2 %v860_v61  ;;  %776 = vset.pattern.permute.xlu1 %v860_v61 }
 0xcb8   :  { %777 = vset.pattern.permute.xlu0 %v860_v61 }
 0xcbc   :  { %v815_v62 = vpop.eup %814 }
 0xcbd   :  { %495 = vrot.lane.b32.xlu0 %v815_v62, %s859_s4 }
 0xd2f   :  { %v496_v1 = vpop.permute.xlu0 %495 }
 0xd30   :  { %v498_v2 = vmul.f32 %v496_v1, %v493_v63  ;;  %v702_v1 = vld [vmem:[%s1049_s6] sm:$0xff]  ;;  %s861_s6 = smov [#allocation3]  }
 0xd31   :  { %s736_s24 = sshll.u32 %s861_s6, 4  ;;  %s737_s24 = int_to_ptr.vmem [resolvable:$true] %s736_s24 }
 0xd32   :  { %v502_v4 = vadd.f32 %v501_v3, %v498_v2 }
 0xd34   :  { %v504_v5 = vrot.slane %v502_v4, 2  ;;  %v571_v9 = vrot.slane %v502_v4, 6  ;;  %v659_v41 = vsel %vm653_vm15, %v998_v39, %v502_v4 }
 0xd36   :  { %505 = vrot.lane.b32.xlu1 %v504_v5, %s859_s4 }
 0xda8   :  { %v506_v7 = vpop.permute.xlu1 %505 }
 0xda9   :  { %764 = vmatmul.msk.f32.vlgmr.msrb.gmra.mxu0 %vm80_vm2, %v506_v7 }
 0xe26   :  { %v526_v10 = vpop.f32.mrf.mxu0 }
 0xe27   :  { %v530_v11 = vrot.slane %v526_v10, 4  ;;  %v552_v12 = vadd.f32 %v526_v10, %v933_v6 }
 0xe29   :  { %v532_v13 = vadd.f32 %v530_v11, %v992_v15  ;;  %v554_v14 = vrot.slane %v552_v12, 4  ;;  %v717_v12 = vld [vmem:[#allocation2] sm:$0x1] }
 0xe2b   :  { %v765_v16 = vmul.f32 -1.442695, %v532_v13  ;;  %555 = vrot.lane.b32.xlu2 %v554_v14, %s858_s1 }
 0xe2d   :  { %816 = vpow2.f32 %v765_v16 }
 0xe33   :  { %v817_v17 = vpop.eup %816 }
 0xe34   :  { %v536_v18 = vadd.f32 1.0, %v817_v17 }
 0xe36   :  { %818 = vrcp.f32 %v536_v18  ;;  %v548_v22 = vand.u32 2147483648, %v536_v18  ;;  %v546_v24 = vand.u32 2147483647, %v536_v18  ;;  %vm542_vm4 = vweird.f32 %v536_v18 }
 0xe38   :  { %v549_v26 = vor.u32 1.1754944e-38, %v548_v22  ;;  %vm547_vm6 = vcmp.eq.f32.partialorder %v546_v24, 8.507059e+37 }
 0xe3c   :  { %v819_v19 = vpop.eup %818 }
 0xe3d   :  { %v538_v20 = vmul.f32 %v819_v19, %v536_v18  ;;  %vm543_vm3 = vweird.f32 %v819_v19 }
 0xe3e   :  { %vm544_vm5 = vmor %vm542_vm4, %vm543_vm3 }
 0xe3f   :  { %v539_v21 = vsub.f32 1.0, %v538_v20 }
 0xe41   :  { %v540_v23 = vmul.f32 %v819_v19, %v539_v21 }
 0xe43   :  { %v541_v25 = vadd.f32 %v819_v19, %v540_v23 }
 0xe45   :  { %v545_v27 = vsel %vm544_vm5, %v819_v19, %v541_v25 }
 0xe46   :  { %v550_v28 = vsel %vm547_vm6, %v549_v26, %v545_v27 }
 0xe47   :  { %v573_v29 = vmul.f32 %v571_v9, %v550_v28  ;;  %v565_v35 = vsub.f32 1.0, %v550_v28 }
 0xe85   :  { %v556_v30 = vpop.permute.xlu2 %555 }
 0xe86   :  { %v558_v31 = vmul.f32 %v556_v30, %v550_v28 }
 0xe88   :  { %560 = vrot.lane.b32.xlu0 %v558_v31, %s857_s19 }
 0xefa   :  { %v561_v32 = vpop.permute.xlu0 %560 }
 0xefb   :  { %v563_v33 = vadd.f32 %v561_v32, %v992_v15 }
 0xefd   :  { %820 = vtanh.f32 %v563_v33 }
 0xf03   :  { %v821_v34 = vpop.eup %820 }
 0xf04   :  { %567 = vrot.lane.b32.xlu1 %v821_v34, %s859_s4 }
 0xf76   :  { %v568_v37 = vpop.permute.xlu1 %567 }
 0xf77   :  { %v570_v38 = vmul.f32 %v568_v37, %v565_v35 }
 0xf79   :  { %v574_v40 = vadd.f32 %v573_v29, %v570_v38 }
 0xf7b   :  { %v576_v42 = vrot.slane %v574_v40, 4  ;;  %v660_v43 = vsel %vm655_vm0, %v659_v41, %v574_v40  ;;  %v643_v4 = vrot.slane %v574_v40, 6 }
 0xf7d   :  { %577 = vrot.lane.b32.xlu2 %v576_v42, %s859_s4 }
 0xfd7   :  { %v578_v44 = vpop.permute.xlu2 %577 }
 0xfd8   :  { %766 = vmatmul.msk.f32.vlgmr.msra.gmra.mxu1 %vm80_vm2, %v578_v44 }
0x1055   :  { %v598_v45 = vpop.f32.mrf.mxu1 }
0x1056   :  { %v624_v46 = vadd.f32 %v598_v45, %v933_v6  ;;  %v602_v36 = vrot.slane %v598_v45, 2 }
0x1058   :  { %v626_v47 = vrot.slane %v624_v46, 2  ;;  %v604_v39 = vadd.f32 %v602_v36, %v992_v15 }
0x105a   :  { %627 = vrot.lane.b32.xlu0 %v626_v47, %s858_s1  ;;  %v767_v48 = vmul.f32 -1.442695, %v604_v39 }
0x105c   :  { %822 = vpow2.f32 %v767_v48 }
0x1062   :  { %664 = vrot.lane.b32.xlu0 %v981_v8, %s859_s4  ;;  %v823_v49 = vpop.eup %822 }
0x1063   :  { %v608_v50 = vadd.f32 1.0, %v823_v49 }
0x1065   :  { %824 = vrcp.f32 %v608_v50  ;;  %v620_v6 = vand.u32 2147483648, %v608_v50  ;;  %vm614_vm15 = vweird.f32 %v608_v50  ;;  %v618_v56 = vand.u32 2147483647, %v608_v50 }
0x1067   :  { %v621_v8 = vor.u32 1.1754944e-38, %v620_v6  ;;  %vm619_vm1 = vcmp.eq.f32.partialorder %v618_v56, 8.507059e+37 }
0x106b   :  { %v825_v51 = vpop.eup %824 }
0x106c   :  { %v610_v52 = vmul.f32 %v825_v51, %v608_v50  ;;  %vm615_vm2 = vweird.f32 %v825_v51 }
0x106d   :  { %vm616_vm0 = vmor %vm614_vm15, %vm615_vm2 }
0x106e   :  { %v611_v53 = vsub.f32 1.0, %v610_v52 }
0x1070   :  { %v612_v54 = vmul.f32 %v825_v51, %v611_v53 }
0x1072   :  { %v613_v55 = vadd.f32 %v825_v51, %v612_v54 }
0x1074   :  { %v617_v57 = vsel %vm616_vm0, %v825_v51, %v613_v55 }
0x1075   :  { %v622_v59 = vsel %vm619_vm1, %v621_v8, %v617_v57 }
0x1076   :  { %v637_v3 = vsub.f32 1.0, %v622_v59  ;;  %v645_v7 = vmul.f32 %v643_v4, %v622_v59 }
0x10cc   :  { %v628_v58 = vpop.permute.xlu0 %627 }
0x10cd   :  { %v630_v60 = vmul.f32 %v628_v58, %v622_v59 }
0x10cf   :  { %632 = vrot.lane.b32.xlu1 %v630_v60, %s857_s19 }
0x10d4   :  { %v665_v2 = vpop.permute.xlu0 %664 }
0x1141   :  { %v633_v62 = vpop.permute.xlu1 %632 }
0x1142   :  { %v635_v63 = vadd.f32 %v633_v62, %v992_v15 }
0x1144   :  { %826 = vtanh.f32 %v635_v63 }
0x114a   :  { %v827_v0 = vpop.eup %826 }
0x114b   :  { %639 = vrot.lane.b32.xlu2 %v827_v0, %s859_s4 }
0x1153   :  { %705 = vperm.xlu2 %775, %v702_v1  }
0x1179   :  { %670 = vxpose.xlu2.b32.start [1/2] (short) (narrow) %v665_v2, 8 }
0x11a5   :  { %v640_v5 = vpop.permute.xlu2 %639 }
0x11a6   :  { %v642_v10 = vmul.f32 %v640_v5, %v637_v3 }
0x11a8   :  { %v646_v11 = vadd.f32 %v645_v7, %v642_v10 }
0x11aa   :  { %648 = vrot.lane.b32.xlu0 %v646_v11, %s859_s4  ;;  %v661_v15 = vsel %vm657_vm7, %v660_v43, %v646_v11  ;;  %vm709_vm7 = vcmask 130048  }
0x11ab   :  { %666 = vrot.lane.b32.xlu1 %v661_v15, %s859_s4 }
0x11ad   :  { %v706_v16 = vpop.permute.xlu2 %705 }
0x11b3   :  { %720 = vperm.xlu1 %776, %v717_v12  }
0x121c   :  { %v649_v13 = vpop.permute.xlu0 %648 }
0x121d   :  { %652 = vst.msk [vmem:[#allocation3 - $0x6] sm:$0xc0] %vm651_vm8, %v649_v13  ;;  %v667_v14 = vpop.permute.xlu1 %666 }
0x121e   :  { %671 = vxpose.xlu2.b32.end [2/2] (short) (narrow) %v667_v14, 8  ;;  %741 = dma.vmem_to_hbm [thread:$0]  %s737_s24, 32, %s739_s27, [#allocation4]  }
0x1225   :  { %v721_v23 = vpop.permute.xlu1 %720 }
0x1226   :  { %v723_v26 = vperm.slane %v721_v23, 0 }
0x12af   :  { %v686_v17 = vpop.trf.xlu2 }
0x12b0   :  { %v708_v18 = vmul.f32 %v706_v16, %v686_v17 }
0x12b2   :  { %v710_v19 = vsel %vm709_vm7, %v708_v18, 0.0 }
0x12b3   :  { %v711_v20 = vrot.slane %v710_v19, 4 }
0x12b5   :  { %v712_v21 = vadd.f32 %v711_v20, %v710_v19 }
0x12b7   :  { %v713_v22 = vrot.slane %v712_v21, 2 }
0x12b9   :  { %v714_v24 = vadd.f32 %v713_v22, %v712_v21 }
0x12bb   :  { %v715_v25 = vrot.slane %v714_v24, 1 }
0x12bd   :  { %v716_v27 = vadd.f32 %v715_v25, %v714_v24 }
0x12bf   :  { %v724_v9 = vadd.f32 %v723_v26, %v716_v27 }
0x12c1   :  { %v725_v28 = vmul.f32 1.442695, %v724_v9 }
0x12c3   :  { %828 = vpow2.f32 %v725_v28 }
0x12c9   :  { %v829_v29 = vpop.eup %828 }
0x12ca   :  { %728 = vst.msk [vmem:[%s1051_s8] sm:$0x1] %vm727_vm9, %v829_v29 }
0x12cb   :  { %854 = dma.done.wait [#allocation4], 32  }
0x12cc   :  { %855 = vsyncadd [#allocation4], 4294967264 }
0x12cd   :  { %748 = vsyncpa [#allocation4], 1 }

</bundles_post_ra>
